<compile_context>
chip_gen: v6e
topology: v6e:2x2x1
jax: 0.10.0
libtpu: 0.0.40
codegen_flags: <defaults>
</compile_context>

<pallas_src>
import functools

import numpy as np

import jax
import jax.numpy as jnp
from jax.experimental import pallas as pl
from jax.experimental.pallas import tpu as pltpu


def _critic_kernel(x_ref, w1_ref, b1_ref, w2_ref, b2_ref, w3_ref, o_ref, *,
                   compute_dtype):
    # Layer 1: (H1, S+A) @ (S+A, TB) -> (H1, TB). f32 accumulation on the MXU;
    # bias add + tanh in f32 (v5e VPU/EUP have no bf16).
    h1 = jnp.tanh(
        jnp.dot(w1_ref[...], x_ref[...], preferred_element_type=jnp.float32)
        + b1_ref[...])
    # Layer 2: (H2, H1) @ (H1, TB) -> (H2, TB).
    h2 = jnp.tanh(
        jnp.dot(w2_ref[...], h1.astype(compute_dtype),
                preferred_element_type=jnp.float32)
        + b2_ref[...])
    # Layer 3: (1, H2) @ (H2, TB) -> lane-dense (1, TB) row; no transpose.
    o_ref[...] = jnp.dot(w3_ref[...], h2.astype(compute_dtype),
                         preferred_element_type=jnp.float32
                         ).astype(o_ref.dtype)


def gaussian_critic_forward(state, action, params, *, block_rows=4096,
                            compute_dtype=jnp.float32):
    """Pallas forward for GaussianCritic.

    state:  (B, state_dim)  float32
    action: (B, action_dim) float32
    params: w1 (S+A, H1), b1 (1, H1), w2 (H1, H2), b2 (1, H2),
            w3 (H2, 1),  b3 (1, 1)
    returns: (B,) float32
    """
    assert block_rows % 128 == 0, "block_rows must be lane-aligned"
    B, S = state.shape
    A = action.shape[-1]
    H1 = params["w1"].shape[1]
    H2 = params["w2"].shape[1]
    K = S + A
    cd = np.dtype(compute_dtype)

    # Batch tiling (batch is the 128-lane axis in the transposed layout):
    #   * large B: fixed block_rows-wide tiles;
    #   * 256 <= B <= block_rows: split into >= 2 tiles so both v7x
    #     TensorCores get work;
    #   * tiny B: one 128-lane tile.
    if B > block_rows:
        tb = block_rows
    elif B >= 256:
        half = -(-B // 2)
        tb = -(-half // 128) * 128
    else:
        tb = 128
    grid = pl.cdiv(B, tb)
    b_pad = grid * tb

    # Lane-dense (feature, batch) input: the concat folds into the mandatory
    # wrapper-side transpose (same HBM bytes as two separate transposes), so
    # layer 1 is a single K = S+A matmul with no in-kernel gather/copy.
    x_t = jnp.concatenate([state, action], axis=-1).astype(cd).T    # (K, B)
    if b_pad != B:
        x_t = jnp.pad(x_t, ((0, 0), (0, b_pad - B)))

    w1_t = params["w1"].T.astype(cd)        # (H1, K)
    w2_t = params["w2"].T.astype(cd)        # (H2, H1)
    w3_r = params["w3"].T.astype(cd)        # (1, H2)  lane-dense final weight
    b1_c = params["b1"].T                   # (H1, 1)  f32 (elementwise in f32)
    b2_c = params["b2"].T                   # (H2, 1)  f32

    batch_spec = lambda i: (0, i)
    const_spec = lambda i: (0, 0)           # weights/biases stay VMEM-resident

    cost = pl.CostEstimate(
        flops=2 * b_pad * (K * H1 + H1 * H2 + H2),
        transcendentals=b_pad * (H1 + H2),
        bytes_accessed=(cd.itemsize * (b_pad * K + K * H1 + H1 * H2 + H2)
                        + 4 * (H1 + H2 + b_pad)),
    )

    out = pl.pallas_call(
        functools.partial(_critic_kernel, compute_dtype=cd),
        out_shape=jax.ShapeDtypeStruct((1, b_pad), jnp.float32),
        grid=(grid,),
        in_specs=[
            pl.BlockSpec((K, tb), batch_spec),     # concat'd input tile
            pl.BlockSpec((H1, K), const_spec),     # W1^T
            pl.BlockSpec((H1, 1), const_spec),     # b1 (column)
            pl.BlockSpec((H2, H1), const_spec),    # W2^T
            pl.BlockSpec((H2, 1), const_spec),     # b2 (column)
            pl.BlockSpec((1, H2), const_spec),     # w3^T (row)
        ],
        out_specs=pl.BlockSpec((1, tb), lambda i: (0, i)),
        compiler_params=pltpu.CompilerParams(
            dimension_semantics=("parallel",)),
        cost_estimate=cost,
    )(x_t, w1_t, b1_c, w2_t, b2_c, w3_r)

    # b3 is a scalar: add it on the JAX side; also squeeze(-1) + drop padding.
    return out[0, :B] + params["b3"][0, 0]


def init_params(key, state_dim, action_dim, hidden_sizes=(64, 64)):
    """Deterministic init matching the shapes of mlp([S+A, 64, 64, 1], Tanh)."""
    sizes = [state_dim + action_dim] + list(hidden_sizes) + [1]
    params = {}
    for j in range(len(sizes) - 1):
        key, kw, kb = jax.random.split(key, 3)
        bound = 1.0 / jnp.sqrt(sizes[j])
        params[f"w{j + 1}"] = jax.random.uniform(
            kw, (sizes[j], sizes[j + 1]), jnp.float32, -bound, bound
        )
        params[f"b{j + 1}"] = jax.random.uniform(
            kb, (1, sizes[j + 1]), jnp.float32, -bound, bound
        )
    return params


def reference_forward(state, action, params):
    x = jnp.concatenate([state, action], axis=-1)
    h1 = jnp.tanh(x @ params["w1"] + params["b1"])
    h2 = jnp.tanh(h1 @ params["w2"] + params["b2"])
    v = h2 @ params["w3"] + params["b3"]
    return v[:, 0]


if __name__ == "__main__":
    state_dim, action_dim = 12, 4
    key = jax.random.PRNGKey(0)
    key, kp = jax.random.split(key)
    params = init_params(kp, state_dim, action_dim, hidden_sizes=(64, 64))

    # Case 1: tiny batch (single 128-lane tile, lane padding path).
    key, ks, ka = jax.random.split(key, 3)
    state = jax.random.normal(ks, (8, state_dim), jnp.float32)
    action = jax.random.normal(ka, (8, action_dim), jnp.float32)
    value = jax.block_until_ready(
        jax.jit(gaussian_critic_forward)(state, action, params))
    ref = reference_forward(state, action, params)
    assert value.shape == (8,)
    assert jnp.allclose(value, ref, atol=1e-4, rtol=1e-4)

    # Case 2: B=300 -> tb=256, grid=2 (multi-step grid + tail padding).
    key, ks, ka = jax.random.split(key, 3)
    B2 = 300
    state2 = jax.random.normal(ks, (B2, state_dim), jnp.float32)
    action2 = jax.random.normal(ka, (B2, action_dim), jnp.float32)
    value2 = jax.block_until_ready(
        jax.jit(gaussian_critic_forward)(state2, action2, params))
    ref2 = reference_forward(state2, action2, params)
    assert value2.shape == (B2,)
    assert jnp.allclose(value2, ref2, atol=1e-4, rtol=1e-4)

    # Case 3: bf16 operands (v6e/v7x MXU fast path), f32 accumulation.
    fwd_bf16 = jax.jit(functools.partial(gaussian_critic_forward,
                                         compute_dtype=jnp.bfloat16))
    value3 = jax.block_until_ready(fwd_bf16(state2, action2, params))
    assert value3.shape == (B2,)
    assert jnp.allclose(value3, ref2, atol=3e-2, rtol=3e-2)

    print("KERNEL_OK")
</pallas_src>

<mosaic_0001>
module attributes {stable_mosaic.version = 11 : i64} {
  func.func @_critic_kernel(%arg0: i32, %arg1: memref<16x128xf32, #tpu.memory_space<vmem>>, %arg2: memref<64x16xf32, #tpu.memory_space<vmem>>, %arg3: memref<64x1xf32, #tpu.memory_space<vmem>>, %arg4: memref<64x64xf32, #tpu.memory_space<vmem>>, %arg5: memref<64x1xf32, #tpu.memory_space<vmem>>, %arg6: memref<1x64xf32, #tpu.memory_space<vmem>>, %arg7: memref<1x128xf32, #tpu.memory_space<vmem>>) attributes {dimension_semantics = [#tpu.dimension_semantics<parallel>], iteration_bounds = array<i64: 1>, scalar_prefetch = 0 : i64, scratch_operands = 0 : i64, tpu.core_type = #tpu.core_type<tc>, window_params = [{transform_indices = @transform_0, window_bounds = array<i64: 16, 128>}, {pipeline_mode = #tpu.pipeline_mode<synchronous>, transform_indices = @transform_1, window_bounds = array<i64: 64, 16>}, {pipeline_mode = #tpu.pipeline_mode<synchronous>, transform_indices = @transform_2, window_bounds = array<i64: 64, 1>}, {pipeline_mode = #tpu.pipeline_mode<synchronous>, transform_indices = @transform_3, window_bounds = array<i64: 64, 64>}, {pipeline_mode = #tpu.pipeline_mode<synchronous>, transform_indices = @transform_4, window_bounds = array<i64: 64, 1>}, {pipeline_mode = #tpu.pipeline_mode<synchronous>, transform_indices = @transform_5, window_bounds = array<i64: 1, 64>}, {transform_indices = @transform_6, window_bounds = array<i64: 1, 128>}]} {
    %c0 = arith.constant 0 : index
    %c0_0 = arith.constant 0 : index
    %0 = vector.load %arg2[%c0, %c0_0] : memref<64x16xf32, #tpu.memory_space<vmem>>, vector<64x16xf32>
    %c0_1 = arith.constant 0 : index
    %c0_2 = arith.constant 0 : index
    %1 = vector.load %arg1[%c0_1, %c0_2] : memref<16x128xf32, #tpu.memory_space<vmem>>, vector<16x128xf32>
    %cst = arith.constant dense<0.000000e+00> : vector<64x128xf32>
    %2 = tpu.matmul %0, %1, %cst {dimension_numbers = #tpu.dot_dimension_numbers<[1], [0], [0], [1], [0, 0, 1, 1], [], []>} : vector<64x16xf32>, vector<16x128xf32>, vector<64x128xf32> -> vector<64x128xf32>
    %c0_3 = arith.constant 0 : index
    %c0_4 = arith.constant 0 : index
    %3 = vector.load %arg3[%c0_3, %c0_4] : memref<64x1xf32, #tpu.memory_space<vmem>>, vector<64x1xf32>
    %4 = vector.broadcast %3 : vector<64x1xf32> to vector<64x128xf32>
    %5 = arith.addf %2, %4 : vector<64x128xf32>
    %6 = math.tanh %5 : vector<64x128xf32>
    %c0_5 = arith.constant 0 : index
    %c0_6 = arith.constant 0 : index
    %7 = vector.load %arg4[%c0_5, %c0_6] : memref<64x64xf32, #tpu.memory_space<vmem>>, vector<64x64xf32>
    %cst_7 = arith.constant dense<0.000000e+00> : vector<64x128xf32>
    %8 = tpu.matmul %7, %6, %cst_7 {dimension_numbers = #tpu.dot_dimension_numbers<[1], [0], [0], [1], [0, 0, 1, 1], [], []>} : vector<64x64xf32>, vector<64x128xf32>, vector<64x128xf32> -> vector<64x128xf32>
    %c0_8 = arith.constant 0 : index
    %c0_9 = arith.constant 0 : index
    %9 = vector.load %arg5[%c0_8, %c0_9] : memref<64x1xf32, #tpu.memory_space<vmem>>, vector<64x1xf32>
    %10 = vector.broadcast %9 : vector<64x1xf32> to vector<64x128xf32>
    %11 = arith.addf %8, %10 : vector<64x128xf32>
    %12 = math.tanh %11 : vector<64x128xf32>
    %c0_10 = arith.constant 0 : index
    %c0_11 = arith.constant 0 : index
    %13 = vector.load %arg6[%c0_10, %c0_11] : memref<1x64xf32, #tpu.memory_space<vmem>>, vector<1x64xf32>
    %cst_12 = arith.constant dense<0.000000e+00> : vector<1x128xf32>
    %14 = tpu.matmul %13, %12, %cst_12 {dimension_numbers = #tpu.dot_dimension_numbers<[1], [0], [0], [1], [0, 0, 1, 1], [], []>} : vector<1x64xf32>, vector<64x128xf32>, vector<1x128xf32> -> vector<1x128xf32>
    %c0_13 = arith.constant 0 : index
    %c0_14 = arith.constant 0 : index
    %15 = vector.load %arg7[%c0_13, %c0_14] : memref<1x128xf32, #tpu.memory_space<vmem>>, vector<1x128xf32>
    tpu.vector_store %arg7[%c0_13, %c0_14], %14 {strides = array<i32>} : memref<1x128xf32, #tpu.memory_space<vmem>>, vector<1x128xf32>,
    return
  }
  func.func @transform_0(%arg0: i32) -> (i32, i32) {
    %c0_i32 = arith.constant 0 : i32
    %c0_i32_0 = arith.constant 0 : i32
    return %c0_i32, %arg0 : i32, i32
  }
  func.func @transform_1(%arg0: i32) -> (i32, i32) {
    %c0_i32 = arith.constant 0 : i32
    %c0_i32_0 = arith.constant 0 : i32
    %c0_i32_1 = arith.constant 0 : i32
    return %c0_i32, %c0_i32_0 : i32, i32
  }
  func.func @transform_2(%arg0: i32) -> (i32, i32) {
    %c0_i32 = arith.constant 0 : i32
    %c0_i32_0 = arith.constant 0 : i32
    %c0_i32_1 = arith.constant 0 : i32
    return %c0_i32, %c0_i32_0 : i32, i32
  }
  func.func @transform_3(%arg0: i32) -> (i32, i32) {
    %c0_i32 = arith.constant 0 : i32
    %c0_i32_0 = arith.constant 0 : i32
    %c0_i32_1 = arith.constant 0 : i32
    return %c0_i32, %c0_i32_0 : i32, i32
  }
  func.func @transform_4(%arg0: i32) -> (i32, i32) {
    %c0_i32 = arith.constant 0 : i32
    %c0_i32_0 = arith.constant 0 : i32
    %c0_i32_1 = arith.constant 0 : i32
    return %c0_i32, %c0_i32_0 : i32, i32
  }
  func.func @transform_5(%arg0: i32) -> (i32, i32) {
    %c0_i32 = arith.constant 0 : i32
    %c0_i32_0 = arith.constant 0 : i32
    %c0_i32_1 = arith.constant 0 : i32
    return %c0_i32, %c0_i32_0 : i32, i32
  }
  func.func @transform_6(%arg0: i32) -> (i32, i32) {
    %c0_i32 = arith.constant 0 : i32
    %c0_i32_0 = arith.constant 0 : i32
    return %c0_i32, %arg0 : i32, i32
  }
}

</mosaic_0001>

<bundles_post_ra>
// kernel: gaussian_critic_forward.1
= control target key start
LH: loop header
LB: loop body
LE: loop exit
PB: predicated region body
PF: predicated region fallthrough
CT: control target
= control target key end

     0   :  { %vm81_vm0 = vcmask 130048   ;;  %v644_v3 = vmov 0   ;;  %vm275_vm1 = vcmask 523264   ;;  %vm646_vm2 = vmmov 0   ;;  %s807_s0 = inlined_call_operand.vmem [shape: f32[16,128], index: 0, kind: input, shape index: {}]   ;;  %s808_s1 = inlined_call_operand.vmem [shape: f32[64,16], index: 1, kind: input, shape index: {}]   ;;  %s809_s2 = inlined_call_operand.vmem [shape: f32[64,1], index: 2, kind: input, shape index: {}]   ;;  %s810_s4 = inlined_call_operand.vmem [shape: f32[64,1], index: 4, kind: input, shape index: {}]   ;;  %s811_s3 = inlined_call_operand.vmem [shape: f32[64,64], index: 3, kind: input, shape index: {}]   ;;  %s812_s5 = inlined_call_operand.vmem [shape: f32[1,64], index: 5, kind: input, shape index: {}]   ;;  %s813_s6 = inlined_call_operand.vmem [shape: f32[1,128], index: 6, kind: output, shape index: {}]  }
   0x1   :  { %v32_v0 = vld [vmem:[%s807_s0 + $0x8] sm:$0xff]  ;;  %v31_v1 = vld [vmem:[%s807_s0] sm:$0xff]  ;;  %610 = vset.pattern.permute.xlu0 %v644_v3  ;;  %611 = vset.pattern.permute.xlu1 %v644_v3  ;;  %v25_v5 = vld [vmem:[%s808_s1 + $0x10] sm:$0xff]  ;;  %v645_v3 = vmov 0.0  }
   0x2   :  { %v23_v2 = vld [vmem:[%s808_s1] sm:$0xff]  ;;  %544 = vmatprep.subr.mxu0 %v32_v0  ;;  %v24_v4 = vld [vmem:[%s808_s1 + $0x8] sm:$0xff]  ;;  %v40_v6 = vld [vmem:[%s809_s2 + $0x38] sm:$0xff] }
   0x3   :  { %548 = vmatprep.mubr.msk.f32.mxu0 %vm81_vm0, %v23_v2  ;;  %545 = vmatpush3.msra.mxu0 %v32_v0  ;;  %v38_v7 = vld [vmem:[%s809_s2 + $0x28] sm:$0xff]  ;;  %v39_v8 = vld [vmem:[%s809_s2 + $0x30] sm:$0xff]  ;;  %v26_v9 = vld [vmem:[%s808_s1 + $0x18] sm:$0xff] }
   0x4   :  { %546 = vmatprep.subr.mxu0 %v31_v1  ;;  %78 = vperm.xlu0 %610, %v40_v6   ;;  %v37_v10 = vld [vmem:[%s809_s2 + $0x20] sm:$0xff]  ;;  %v36_v12 = vld [vmem:[%s809_s2 + $0x18] sm:$0xff]  ;;  %v28_v13 = vld [vmem:[%s808_s1 + $0x28] sm:$0xff] }
   0x5   :  { %547 = vmatpush3.msra.mxu0 %v31_v1  ;;  %68 = vperm.xlu1 %611, %v38_v7   ;;  %v27_v11 = vld [vmem:[%s808_s1 + $0x20] sm:$0xff]  ;;  %v35_v14 = vld [vmem:[%s809_s2 + $0x10] sm:$0xff]  ;;  %v34_v16 = vld [vmem:[%s809_s2 + $0x8] sm:$0xff] }
   0x6   :  { %549 = vmatmul.mubr.msk.f32.vlgmr.msra.gmra.mxu0 %vm81_vm0, %v24_v4  ;;  %v29_v15 = vld [vmem:[%s808_s1 + $0x30] sm:$0xff]  ;;  %v30_v17 = vld [vmem:[%s808_s1 + $0x38] sm:$0xff]  ;;  %v33_v18 = vld [vmem:[%s809_s2] sm:$0xff]  ;;  %588 = vmatprep.subr.mxu0 %v645_v3 }
   0x7   :  { %551 = vmatprep.mubr.msk.f32.mxu0 %vm81_vm0, %v25_v5  ;;  %v234_v19 = vld [vmem:[%s810_s4 + $0x38] sm:$0xff]  ;;  %v233_v20 = vld [vmem:[%s810_s4 + $0x30] sm:$0xff]  ;;  %v232_v21 = vld [vmem:[%s810_s4 + $0x28] sm:$0xff] }
   0x8   :  { %73 = vperm.xlu0 %610, %v39_v8   ;;  %v231_v22 = vld [vmem:[%s810_s4 + $0x20] sm:$0xff]  ;;  %v230_v23 = vld [vmem:[%s810_s4 + $0x18] sm:$0xff]  ;;  %v229_v24 = vld [vmem:[%s810_s4 + $0x10] sm:$0xff] }
   0x9   :  { %63 = vperm.xlu1 %611, %v37_v10   ;;  %v228_v25 = vld [vmem:[%s810_s4 + $0x8] sm:$0xff]  ;;  %v227_v26 = vld [vmem:[%s810_s4] sm:$0xff]  ;;  %v221_v61 = vld [vmem:[%s811_s3 + $0x10] sm:$0xff] }
   0xa   :  { %552 = vmatmul.mubr.msk.f32.gmra.mxu0 %vm81_vm0, %v26_v9  ;;  %v219_v27 = vld [vmem:[%s811_s3] sm:$0xff]  ;;  %v220_v60 = vld [vmem:[%s811_s3 + $0x8] sm:$0xff]  ;;  %v222_v62 = vld [vmem:[%s811_s3 + $0x18] sm:$0xff] }
   0xb   :  { %554 = vmatprep.mubr.msk.f32.mxu0 %vm81_vm0, %v27_v11  ;;  %576 = vmatprep.mubr.msk.f32.mxu1 %vm275_vm1, %v219_v27  ;;  %v223_v63 = vld [vmem:[%s811_s3 + $0x20] sm:$0xff]  ;;  %v224_v0 = vld [vmem:[%s811_s3 + $0x28] sm:$0xff]  ;;  %v225_v1 = vld [vmem:[%s811_s3 + $0x30] sm:$0xff] }
   0xc   :  { %58 = vperm.xlu0 %610, %v36_v12   ;;  %v226_v2 = vld [vmem:[%s811_s3 + $0x38] sm:$0xff] }
   0xd   :  { %53 = vperm.xlu1 %611, %v35_v14  }
   0xe   :  { %555 = vmatmul.mubr.msk.f32.gmra.mxu0 %vm81_vm0, %v28_v13 }
   0xf   :  { %557 = vmatprep.mubr.msk.f32.mxu0 %vm81_vm0, %v29_v15 }
  0x10   :  { %48 = vperm.xlu0 %610, %v34_v16  }
  0x11   :  { %43 = vperm.xlu1 %611, %v33_v18  }
  0x12   :  { %558 = vmatmul.mubr.msk.f32.gmra.mxu0 %vm81_vm0, %v30_v17 }
  0x13   :  { %604 = vmatprep.mubr.msk.f32.mxu0 %vm646_vm2, %v645_v3 }
  0x14   :  { %272 = vperm.xlu0 %610, %v234_v19  }
  0x15   :  { %267 = vperm.xlu1 %611, %v233_v20  }
  0x18   :  { %262 = vperm.xlu0 %610, %v232_v21  }
  0x19   :  { %257 = vperm.xlu1 %611, %v231_v22  }
  0x1c   :  { %252 = vperm.xlu0 %610, %v230_v23  }
  0x1d   :  { %247 = vperm.xlu1 %611, %v229_v24  }
  0x20   :  { %242 = vperm.xlu0 %610, %v228_v25  }
  0x21   :  { %237 = vperm.xlu1 %611, %v227_v26  }
  0x7f   :  { %v79_v30 = vpop.permute.xlu0 %78 }
  0x80   :  { %v69_v32 = vpop.permute.xlu1 %68 }
  0x83   :  { %v74_v35 = vpop.permute.xlu0 %73 }
  0x84   :  { %v64_v37 = vpop.permute.xlu1 %63 }
  0x87   :  { %v59_v43 = vpop.permute.xlu0 %58 }
  0x88   :  { %v54_v45 = vpop.permute.xlu1 %53 }
  0x8b   :  { %v49_v48 = vpop.permute.xlu0 %48 }
  0x8c   :  { %v44_v50 = vpop.permute.xlu1 %43 }
  0x8f   :  { %v273_v6 = vpop.permute.xlu0 %272 }
  0x90   :  { %v268_v8 = vpop.permute.xlu1 %267 }
  0x93   :  { %v263_v11 = vpop.permute.xlu0 %262 }
  0x94   :  { %v258_v13 = vpop.permute.xlu1 %257 }
  0x97   :  { %v253_v19 = vpop.permute.xlu0 %252 }
  0x98   :  { %v248_v21 = vpop.permute.xlu1 %247 }
  0x9b   :  { %v243_v24 = vpop.permute.xlu0 %242 }
  0x9c   :  { %v238_v26 = vpop.permute.xlu1 %237 }
  0xc6   :  { %v550_v28 = vpop.f32.mrf.mxu0 }
  0xc7   :  { %v178_v49 = vadd.f32 %v550_v28, %v49_v48 }
  0xc8   :  { %v172_v29 = vpop.f32.mrf.mxu0 }
  0xc9   :  { %v173_v51 = vadd.f32 %v172_v29, %v44_v50 }
  0xca   :  { %v553_v31 = vpop.f32.mrf.mxu0 }
  0xcb   :  { %v188_v46 = vadd.f32 %v553_v31, %v59_v43 }
  0xcc   :  { %v182_v33 = vpop.f32.mrf.mxu0 }
  0xcd   :  { %v183_v47 = vadd.f32 %v182_v33, %v54_v45 }
  0xce   :  { %v556_v34 = vpop.f32.mrf.mxu0 }
  0xcf   :  { %v198_v41 = vadd.f32 %v556_v34, %v69_v32 }
  0xd0   :  { %v192_v36 = vpop.f32.mrf.mxu0 }
  0xd1   :  { %v193_v44 = vadd.f32 %v192_v36, %v64_v37 }
  0xd2   :  { %v559_v38 = vpop.f32.mrf.mxu0 }
  0xd3   :  { %v208_v39 = vadd.f32 %v559_v38, %v79_v30 }
  0xd4   :  { %v202_v40 = vpop.f32.mrf.mxu0 }
  0xd5   :  { %612 = vtanh.f32 %v208_v39  ;;  %v203_v42 = vadd.f32 %v202_v40, %v74_v35  ;;  %v413_v35 = vld [vmem:[%s812_s5] sm:$0x1] }
  0xd7   :  { %614 = vtanh.f32 %v203_v42 }
  0xd8   :  { %616 = vtanh.f32 %v198_v41 }
  0xd9   :  { %618 = vtanh.f32 %v193_v44 }
  0xda   :  { %620 = vtanh.f32 %v188_v46 }
  0xdb   :  { %622 = vtanh.f32 %v183_v47 }
  0xdc   :  { %624 = vtanh.f32 %v178_v49 }
  0xdd   :  { %626 = vtanh.f32 %v173_v51 }
  0xe2   :  { %v613_v52 = vpop.eup %612 }
  0xe3   :  { %560 = vmatprep.subr.mxu1 %v613_v52 }
  0xe4   :  { %v615_v53 = vpop.eup %614  ;;  %561 = vmatpush3.msra.mxu1 %v613_v52 }
  0xe5   :  { %562 = vmatprep.subr.mxu1 %v615_v53  ;;  %v617_v54 = vpop.eup %616 }
  0xe6   :  { %563 = vmatpush3.msra.mxu1 %v615_v53  ;;  %v619_v55 = vpop.eup %618 }
  0xe7   :  { %564 = vmatprep.subr.mxu1 %v617_v54  ;;  %v621_v56 = vpop.eup %620 }
  0xe8   :  { %565 = vmatpush3.msra.mxu1 %v617_v54  ;;  %v623_v57 = vpop.eup %622 }
  0xe9   :  { %566 = vmatprep.subr.mxu1 %v619_v55  ;;  %v625_v58 = vpop.eup %624 }
  0xea   :  { %567 = vmatpush3.msra.mxu1 %v619_v55  ;;  %v627_v59 = vpop.eup %626 }
  0xeb   :  { %568 = vmatprep.subr.mxu1 %v621_v56 }
  0xec   :  { %569 = vmatpush3.msra.mxu1 %v621_v56 }
  0xed   :  { %570 = vmatprep.subr.mxu1 %v623_v57 }
  0xee   :  { %571 = vmatpush3.msra.mxu1 %v623_v57 }
  0xef   :  { %572 = vmatprep.subr.mxu1 %v625_v58 }
  0xf0   :  { %573 = vmatpush3.msra.mxu1 %v625_v58 }
  0xf1   :  { %574 = vmatprep.subr.mxu1 %v627_v59 }
  0xf2   :  { %575 = vmatpush3.msra.mxu1 %v627_v59 }
  0xf3   :  { %577 = vmatmul.mubr.msk.f32.vlgmr.msra.gmra.mxu1 %vm275_vm1, %v220_v60 }
  0xf4   :  { %579 = vmatprep.mubr.msk.f32.mxu1 %vm275_vm1, %v221_v61 }
  0xf7   :  { %580 = vmatmul.mubr.msk.f32.gmra.mxu1 %vm275_vm1, %v222_v62 }
  0xf8   :  { %582 = vmatprep.mubr.msk.f32.mxu1 %vm275_vm1, %v223_v63 }
  0xfb   :  { %583 = vmatmul.mubr.msk.f32.gmra.mxu1 %vm275_vm1, %v224_v0 }
  0xfc   :  { %585 = vmatprep.mubr.msk.f32.mxu1 %vm275_vm1, %v225_v1 }
  0xff   :  { %586 = vmatmul.mubr.msk.f32.gmra.mxu1 %vm275_vm1, %v226_v2 }
 0x1b3   :  { %v578_v4 = vpop.f32.mrf.mxu1 }
 0x1b4   :  { %v372_v25 = vadd.f32 %v578_v4, %v243_v24 }
 0x1b5   :  { %v366_v5 = vpop.f32.mrf.mxu1 }
 0x1b6   :  { %v367_v27 = vadd.f32 %v366_v5, %v238_v26 }
 0x1b7   :  { %v581_v7 = vpop.f32.mrf.mxu1 }
 0x1b8   :  { %v382_v22 = vadd.f32 %v581_v7, %v253_v19 }
 0x1b9   :  { %v376_v9 = vpop.f32.mrf.mxu1 }
 0x1ba   :  { %v377_v23 = vadd.f32 %v376_v9, %v248_v21 }
 0x1bb   :  { %v584_v10 = vpop.f32.mrf.mxu1 }
 0x1bc   :  { %v392_v17 = vadd.f32 %v584_v10, %v263_v11 }
 0x1bd   :  { %v386_v12 = vpop.f32.mrf.mxu1 }
 0x1be   :  { %v387_v20 = vadd.f32 %v386_v12, %v258_v13 }
 0x1bf   :  { %v587_v14 = vpop.f32.mrf.mxu1 }
 0x1c0   :  { %v402_v15 = vadd.f32 %v587_v14, %v273_v6 }
 0x1c1   :  { %v396_v16 = vpop.f32.mrf.mxu1 }
 0x1c2   :  { %628 = vtanh.f32 %v402_v15  ;;  %v397_v18 = vadd.f32 %v396_v16, %v268_v8 }
 0x1c4   :  { %630 = vtanh.f32 %v397_v18 }
 0x1c5   :  { %632 = vtanh.f32 %v392_v17 }
 0x1c6   :  { %634 = vtanh.f32 %v387_v20 }
 0x1c7   :  { %636 = vtanh.f32 %v382_v22 }
 0x1c8   :  { %638 = vtanh.f32 %v377_v23 }
 0x1c9   :  { %640 = vtanh.f32 %v372_v25 }
 0x1ca   :  { %642 = vtanh.f32 %v367_v27 }
 0x1cf   :  { %v629_v28 = vpop.eup %628 }
 0x1d0   :  { %589 = vmatpush3.msra.mxu0 %v629_v28 }
 0x1d1   :  { %v631_v29 = vpop.eup %630  ;;  %590 = vmatprep.subr.mxu0 %v645_v3 }
 0x1d2   :  { %591 = vmatpush3.msra.mxu0 %v631_v29  ;;  %v633_v30 = vpop.eup %632 }
 0x1d3   :  { %592 = vmatprep.subr.mxu0 %v645_v3  ;;  %v635_v31 = vpop.eup %634 }
 0x1d4   :  { %593 = vmatpush3.msra.mxu0 %v633_v30  ;;  %v637_v32 = vpop.eup %636 }
 0x1d5   :  { %594 = vmatprep.subr.mxu0 %v645_v3  ;;  %v639_v33 = vpop.eup %638 }
 0x1d6   :  { %595 = vmatpush3.msra.mxu0 %v635_v31  ;;  %v641_v34 = vpop.eup %640 }
 0x1d7   :  { %596 = vmatprep.subr.mxu0 %v645_v3  ;;  %v643_v36 = vpop.eup %642 }
 0x1d8   :  { %597 = vmatpush3.msra.mxu0 %v637_v32 }
 0x1d9   :  { %598 = vmatprep.subr.mxu0 %v645_v3 }
 0x1da   :  { %599 = vmatpush3.msra.mxu0 %v639_v33 }
 0x1db   :  { %600 = vmatprep.subr.mxu0 %v645_v3 }
 0x1dc   :  { %601 = vmatpush3.msra.mxu0 %v641_v34 }
 0x1dd   :  { %602 = vmatprep.subr.mxu0 %v645_v3 }
 0x1de   :  { %603 = vmatpush3.msra.mxu0 %v643_v36 }
 0x1df   :  { %605 = vmatmul.mubr.msk.f32.vlgmr.msra.gmra.mxu0 %vm275_vm1, %v413_v35 }
 0x29f   :  { %v483_v37 = vpop.f32.mrf.mxu0 }
 0x2a0   :  { %487 = vst [vmem:[%s813_s6] sm:$0x1] %v483_v37 }
 0x2a1   :  { %v606_v38 = vpop.f32.mrf.mxu0 }

</bundles_post_ra>
